<compile_context>
chip_gen: v7x
topology: tpu7x:2x2x1
jax: 0.10.0
libtpu: 0.0.40
codegen_flags: <defaults>
</compile_context>

<pallas_src>
import jax
import jax.numpy as jnp
from jax.experimental import pallas as pl
from jax.experimental.pallas import tpu as pltpu

_LANES = 128
_SUB_ROWS = 64          # rows per in-register accumulator (bounds vreg pressure)
_PY_UNROLL_CHUNKS = 16  # python-unroll chunk loops up to this many chunks


def _round_up(a, b):
    return (a + b - 1) // b * b


def _cdiv(a, b):
    return (a + b - 1) // b


def _vmem_capacity_bytes():
    # Conservative fallback = v7x per-TensorCore VMEM.
    default = 64 * 1024 * 1024
    try:
        info = pltpu.get_tpu_info()
        cap = int(getattr(info, "vmem_capacity_bytes", 0))
        if cap > 0:
            return cap
    except Exception:
        pass
    return default


def _make_maxmean_kernel(*, L_total, lane_tile, grid_k, sub_sizes, dtype,
                         use_mxu, use_scratch):
    """Builds the kernel; all arguments are static (Python) values."""
    inv_len = float(1.0 / L_total)
    n_full_inner = lane_tile // _LANES               # chunks per non-last block
    rem = L_total - (grid_k - 1) * lane_tile         # valid cols in last block
    last_full = rem // _LANES
    tail = rem % _LANES
    aligned = (tail == 0) and (last_full == n_full_inner)   # L % lane_tile == 0
    neg_inf = float("-inf")
    f32 = jnp.float32

    def _run_block(x_ref, r0, nrows, n_full, with_tail, s, m):
        # Hoisted constant (splat); only used on the MXU sum path.
        ones_m = jnp.ones((_LANES, _LANES), dtype) if use_mxu else None

        def one_chunk(c, carry):
            s, m = carry
            off = pl.multiple_of(c * _LANES, _LANES)
            chunk = x_ref[pl.ds(r0, nrows), pl.ds(off, _LANES)]
            if use_mxu:
                # MXU does the f32 accumulation; every output lane carries the
                # same per-row chunk sum (replicated), which stays replicated
                # across the accumulation.
                s = s + jnp.dot(chunk, ones_m, preferred_element_type=f32)
            else:
                s = s + chunk.astype(f32)
            m = jnp.maximum(m, chunk)
            return s, m

        if n_full > 0:
            if n_full <= _PY_UNROLL_CHUNKS:
                for c in range(n_full):
                    s, m = one_chunk(c, (s, m))
            else:
                s, m = jax.lax.fori_loop(0, n_full, one_chunk, (s, m), unroll=4)

        if with_tail:
            # Single masked epilogue chunk (only ever on the last block).
            off = n_full * _LANES
            chunk = x_ref[pl.ds(r0, nrows), pl.ds(off, _LANES)]
            lane_iota = jax.lax.broadcasted_iota(jnp.int32, (1, _LANES), 1)
            valid = lane_iota < tail
            if use_mxu:
                # Zero invalid lanes before the dot (0-weight alone would let
                # NaN/Inf garbage from the padded region leak through).
                chunk_z = jnp.where(valid, chunk, jnp.zeros_like(chunk))
                s = s + jnp.dot(chunk_z, ones_m, preferred_element_type=f32)
            else:
                s = s + jnp.where(valid, chunk.astype(f32), 0.0)
            m = jnp.maximum(m, jnp.where(valid, chunk,
                                         jnp.full_like(chunk, neg_inf)))
        return s, m

    def _finalize(mean_ref, max_ref, r0, nrows, s, m):
        if use_mxu:
            row_sum = jnp.max(s, axis=-1)     # every lane holds the full sum
        else:
            row_sum = jnp.sum(s, axis=-1)
        row_max = jnp.max(m.astype(f32), axis=-1)
        mean_ref[:, pl.ds(r0, nrows)] = (
            (row_sum * f32(inv_len)).reshape(1, nrows).astype(mean_ref.dtype))
        max_ref[:, pl.ds(r0, nrows)] = (
            row_max.reshape(1, nrows).astype(max_ref.dtype))

    def kernel(x_ref, mean_ref, max_ref, *scratch):
        if use_scratch:
            sum_acc, max_acc = scratch
            k = pl.program_id(1)
            last_k = grid_k - 1

            @pl.when(k == 0)
            def _init():
                sum_acc[...] = jnp.zeros_like(sum_acc)
                max_acc[...] = jnp.full_like(max_acc, neg_inf)

        r0 = 0
        for nrows in sub_sizes:               # static python sub-tile loop
            if not use_scratch:
                # Single reduction block: everything stays in registers.
                s = jnp.zeros((nrows, _LANES), f32)
                m = jnp.full((nrows, _LANES), neg_inf, dtype)
                s, m = _run_block(x_ref, r0, nrows, last_full, tail > 0, s, m)
                _finalize(mean_ref, max_ref, r0, nrows, s, m)
            elif aligned:
                # Every reduction block is identical: no masking anywhere.
                s = sum_acc[pl.ds(r0, nrows), :]
                m = max_acc[pl.ds(r0, nrows), :]
                s, m = _run_block(x_ref, r0, nrows, n_full_inner, False, s, m)
                sum_acc[pl.ds(r0, nrows), :] = s
                max_acc[pl.ds(r0, nrows), :] = m

                @pl.when(k == last_k)
                def _fin(r0=r0, nrows=nrows, s=s, m=m):
                    _finalize(mean_ref, max_ref, r0, nrows, s, m)
            else:
                # Ragged L: unmasked full chunks on every non-last block; the
                # last block runs its own chunk count + one masked epilogue.
                @pl.when(k < last_k)
                def _body(r0=r0, nrows=nrows):
                    s = sum_acc[pl.ds(r0, nrows), :]
                    m = max_acc[pl.ds(r0, nrows), :]
                    s, m = _run_block(x_ref, r0, nrows, n_full_inner, False,
                                      s, m)
                    sum_acc[pl.ds(r0, nrows), :] = s
                    max_acc[pl.ds(r0, nrows), :] = m

                @pl.when(k == last_k)
                def _last(r0=r0, nrows=nrows):
                    s = sum_acc[pl.ds(r0, nrows), :]
                    m = max_acc[pl.ds(r0, nrows), :]
                    s, m = _run_block(x_ref, r0, nrows, last_full, tail > 0,
                                      s, m)
                    _finalize(mean_ref, max_ref, r0, nrows, s, m)
            r0 += nrows

    return kernel


def _rowwise_maxmean(x2d):
    rows, L = x2d.shape
    dtype = x2d.dtype
    if not jnp.issubdtype(dtype, jnp.floating):
        raise TypeError("maxmean3d: only floating-point inputs are supported")
    itemsize = jnp.dtype(dtype).itemsize

    # VMEM-aware sizing.  48 MiB scoped limit is safe on every generation
    # (even if get_tpu_info over-reports per-chip capacity on a 2-core chip);
    # only the per-block target changes with detected capacity.
    cap = _vmem_capacity_bytes()
    vmem_limit = 48 * 1024 * 1024
    target_block = 16 * 1024 * 1024 if cap >= 100 * 1024 * 1024 else 8 * 1024 * 1024

    L_pad = _round_up(L, _LANES)

    # Row tile: <=64 rows keeps in-register accumulators small; prefer >=2 row
    # tiles so both v7x TensorCores get work.
    tile_rows = max(8, min(_SUB_ROWS, _round_up(_cdiv(rows, 2), 8)))
    lane_cap = max(_LANES,
                   (target_block // (tile_rows * itemsize)) // _LANES * _LANES)
    lane_tile = min(L_pad, lane_cap)

    if lane_tile == L_pad and tile_rows * L_pad * itemsize < 4 * 1024 * 1024:
        # Short-L path (e.g. reduce_frames=False): a single tiny reduction
        # block per row tile -> fatten the row tile toward the block target
        # (sub-tiled to <=64 rows inside the kernel), but keep >=2 row tiles
        # when that still gives >=2 MiB blocks (megacore).
        fat = target_block // max(1, L_pad * itemsize)
        fat = max(8, min(1024, fat))
        fat = min(fat, _round_up(rows, 8))
        half = max(8, _round_up(_cdiv(rows, 2), 8))
        if half * L_pad * itemsize >= 2 * 1024 * 1024:
            fat = min(fat, half)
        tile_rows = max(tile_rows, (fat // 8) * 8)

    grid_r = _cdiv(rows, tile_rows)
    grid_k = _cdiv(L, lane_tile)
    use_scratch = grid_k > 1

    # Static sub-tile sizes (all multiples of 8).
    sub_sizes = [_SUB_ROWS] * (tile_rows // _SUB_ROWS)
    if tile_rows % _SUB_ROWS:
        sub_sizes.append(tile_rows % _SUB_ROWS)

    # MXU sum offload for 16-bit float inputs: HBM delivers 2x elements/byte,
    # so keep only the max on the VPU and let the idle MXU accumulate in f32.
    use_mxu = jnp.dtype(dtype) in (jnp.dtype(jnp.bfloat16), jnp.dtype(jnp.float16))

    kernel = _make_maxmean_kernel(
        L_total=L, lane_tile=lane_tile, grid_k=grid_k,
        sub_sizes=tuple(sub_sizes), dtype=dtype, use_mxu=use_mxu,
        use_scratch=use_scratch)

    scratch_shapes = []
    if use_scratch:
        scratch_shapes = [pltpu.VMEM((tile_rows, _LANES), jnp.float32),
                          pltpu.VMEM((tile_rows, _LANES), dtype)]

    mean_out, max_out = pl.pallas_call(
        kernel,
        out_shape=(
            jax.ShapeDtypeStruct((grid_r, tile_rows), dtype),
            jax.ShapeDtypeStruct((grid_r, tile_rows), dtype),
        ),
        grid=(grid_r, grid_k),
        in_specs=[pl.BlockSpec((tile_rows, lane_tile), lambda i, k: (i, k))],
        out_specs=(
            pl.BlockSpec((1, tile_rows), lambda i, k: (i, 0)),
            pl.BlockSpec((1, tile_rows), lambda i, k: (i, 0)),
        ),
        scratch_shapes=scratch_shapes,
        compiler_params=pltpu.CompilerParams(
            dimension_semantics=("parallel", "arbitrary"),
            vmem_limit_bytes=vmem_limit,
        ),
    )(x2d)
    return mean_out, max_out


def maxmean3d(x, reduce_frames=True):
    """x: (N, C, D, H, W) float array (NCDHW, same as PyTorch)."""
    N, C, D, H, W = x.shape
    if reduce_frames:
        rows, L = N * C, D * H * W
    else:
        rows, L = N * C * D, H * W

    x2d = x.reshape(rows, L)
    mean_out, max_out = _rowwise_maxmean(x2d)

    mean_flat = mean_out.reshape(-1)[:rows]
    max_flat = max_out.reshape(-1)[:rows]

    if reduce_frames:
        x_mean = mean_flat.reshape(N, C)
        x_max = max_flat.reshape(N, C)
        return jnp.concatenate([x_mean, x_max], axis=1)          # (N, 2C)
    else:
        x_mean = mean_flat.reshape(N, C, D)
        x_max = max_flat.reshape(N, C, D)
        return jnp.concatenate([x_mean, x_max], axis=1)          # (N, 2C, D)


def _reference(x, reduce_frames=True):
    if reduce_frames:
        x_mean = jnp.mean(x, axis=(2, 3, 4))
        x_max = jnp.max(x, axis=(2, 3, 4))
        return jnp.concatenate([x_mean, x_max], axis=1)          # (N, 2C)
    else:
        x_mean = jnp.mean(x, axis=(3, 4))
        x_max = jnp.max(x, axis=(3, 4))
        return jnp.concatenate([x_mean, x_max], axis=1)          # (N, 2C, D)


def _check(x, reduce_frames, atol, rtol):
    out = jax.block_until_ready(maxmean3d(x, reduce_frames=reduce_frames))
    ref = _reference(x.astype(jnp.float32), reduce_frames=reduce_frames)
    assert out.shape == ref.shape, (out.shape, ref.shape)
    assert jnp.allclose(out.astype(jnp.float32), ref, atol=atol, rtol=rtol), (
        f"mismatch: reduce_frames={reduce_frames}, shape={x.shape}, "
        f"dtype={x.dtype}")
    return out


if __name__ == "__main__":
    key = jax.random.PRNGKey(0)
    k1, k2, k3, k4 = jax.random.split(key, 4)

    # 1) Small, lane-aligned reduction length (single-block register path).
    x1 = jax.random.normal(k1, (2, 4, 8, 16, 16), dtype=jnp.float32)
    _check(x1, True, 1e-5, 1e-5)
    _check(x1, False, 1e-5, 1e-5)

    # 2) Ragged reduction length (masked epilogue chunk).
    x2 = jax.random.normal(k2, (2, 4, 3, 20, 20), dtype=jnp.float32)
    _check(x2, True, 1e-5, 1e-5)
    _check(x2, False, 1e-5, 1e-5)

    # 3) bf16: exercises the MXU sum-offload path (+ masked epilogue).
    x3 = jax.random.normal(k3, (2, 8, 4, 20, 20),
                           dtype=jnp.float32).astype(jnp.bfloat16)
    _check(x3, True, 5e-2, 5e-2)

    # 4) Large ragged reduction: multi-block reduction axis (VMEM scratch
    #    accumulators, last-block pl.when path), grid_r > 1, fat row tiles on
    #    the reduce_frames=False path.
    x4 = jax.random.normal(k4, (2, 64, 10, 100, 100), dtype=jnp.float32)
    _check(x4, True, 1e-4, 1e-4)
    _check(x4, False, 1e-4, 1e-4)

    # 5) Large aligned reduction: multi-block, no masking anywhere.
    x5 = jax.random.normal(k1, (2, 64, 8, 128, 128), dtype=jnp.float32)
    _check(x5, True, 1e-4, 1e-4)

    print("KERNEL_OK")
</pallas_src>

<mosaic_0001>
module attributes {stable_mosaic.version = 11 : i64} {
  func.func @kernel(%arg0: i32, %arg1: i32, %arg2: memref<8x2048xf32, #tpu.memory_space<vmem>>, %arg3: memref<1x8xf32, #tpu.memory_space<vmem>>, %arg4: memref<1x8xf32, #tpu.memory_space<vmem>>) attributes {dimension_semantics = [#tpu.dimension_semantics<parallel>, #tpu.dimension_semantics<arbitrary>], iteration_bounds = array<i64: 1, 1>, scalar_prefetch = 0 : i64, scratch_operands = 0 : i64, tpu.core_type = #tpu.core_type<tc>, window_params = [{transform_indices = @transform_0, window_bounds = array<i64: 8, 2048>}, {transform_indices = @transform_1, window_bounds = array<i64: 1, 8>}, {transform_indices = @transform_2, window_bounds = array<i64: 1, 8>}]} {
    %cst = arith.constant 0.000000e+00 : f32
    %0 = vector.broadcast %cst : f32 to vector<8x128xf32>
    %cst_0 = arith.constant 0xFF800000 : f32
    %1 = vector.broadcast %cst_0 : f32 to vector<8x128xf32>
    %c0_i32 = arith.constant 0 : i32
    %2 = tpu.assume_multiple %c0_i32, 128 : i32
    %c0 = arith.constant 0 : index
    %3 = arith.index_cast %2 : i32 to index
    %4 = vector.load %arg2[%c0, %3] : memref<8x2048xf32, #tpu.memory_space<vmem>>, vector<8x128xf32>
    %5 = arith.addf %0, %4 : vector<8x128xf32>
    %6 = arith.maximumf %1, %4 : vector<8x128xf32>
    %c128_i32 = arith.constant 128 : i32
    %7 = tpu.assume_multiple %c128_i32, 128 : i32
    %c0_1 = arith.constant 0 : index
    %8 = arith.index_cast %7 : i32 to index
    %9 = vector.load %arg2[%c0_1, %8] : memref<8x2048xf32, #tpu.memory_space<vmem>>, vector<8x128xf32>
    %10 = arith.addf %5, %9 : vector<8x128xf32>
    %11 = arith.maximumf %6, %9 : vector<8x128xf32>
    %c256_i32 = arith.constant 256 : i32
    %12 = tpu.assume_multiple %c256_i32, 128 : i32
    %c0_2 = arith.constant 0 : index
    %13 = arith.index_cast %12 : i32 to index
    %14 = vector.load %arg2[%c0_2, %13] : memref<8x2048xf32, #tpu.memory_space<vmem>>, vector<8x128xf32>
    %15 = arith.addf %10, %14 : vector<8x128xf32>
    %16 = arith.maximumf %11, %14 : vector<8x128xf32>
    %c384_i32 = arith.constant 384 : i32
    %17 = tpu.assume_multiple %c384_i32, 128 : i32
    %c0_3 = arith.constant 0 : index
    %18 = arith.index_cast %17 : i32 to index
    %19 = vector.load %arg2[%c0_3, %18] : memref<8x2048xf32, #tpu.memory_space<vmem>>, vector<8x128xf32>
    %20 = arith.addf %15, %19 : vector<8x128xf32>
    %21 = arith.maximumf %16, %19 : vector<8x128xf32>
    %c512_i32 = arith.constant 512 : i32
    %22 = tpu.assume_multiple %c512_i32, 128 : i32
    %c0_4 = arith.constant 0 : index
    %23 = arith.index_cast %22 : i32 to index
    %24 = vector.load %arg2[%c0_4, %23] : memref<8x2048xf32, #tpu.memory_space<vmem>>, vector<8x128xf32>
    %25 = arith.addf %20, %24 : vector<8x128xf32>
    %26 = arith.maximumf %21, %24 : vector<8x128xf32>
    %c640_i32 = arith.constant 640 : i32
    %27 = tpu.assume_multiple %c640_i32, 128 : i32
    %c0_5 = arith.constant 0 : index
    %28 = arith.index_cast %27 : i32 to index
    %29 = vector.load %arg2[%c0_5, %28] : memref<8x2048xf32, #tpu.memory_space<vmem>>, vector<8x128xf32>
    %30 = arith.addf %25, %29 : vector<8x128xf32>
    %31 = arith.maximumf %26, %29 : vector<8x128xf32>
    %c768_i32 = arith.constant 768 : i32
    %32 = tpu.assume_multiple %c768_i32, 128 : i32
    %c0_6 = arith.constant 0 : index
    %33 = arith.index_cast %32 : i32 to index
    %34 = vector.load %arg2[%c0_6, %33] : memref<8x2048xf32, #tpu.memory_space<vmem>>, vector<8x128xf32>
    %35 = arith.addf %30, %34 : vector<8x128xf32>
    %36 = arith.maximumf %31, %34 : vector<8x128xf32>
    %c896_i32 = arith.constant 896 : i32
    %37 = tpu.assume_multiple %c896_i32, 128 : i32
    %c0_7 = arith.constant 0 : index
    %38 = arith.index_cast %37 : i32 to index
    %39 = vector.load %arg2[%c0_7, %38] : memref<8x2048xf32, #tpu.memory_space<vmem>>, vector<8x128xf32>
    %40 = arith.addf %35, %39 : vector<8x128xf32>
    %41 = arith.maximumf %36, %39 : vector<8x128xf32>
    %c1024_i32 = arith.constant 1024 : i32
    %42 = tpu.assume_multiple %c1024_i32, 128 : i32
    %c0_8 = arith.constant 0 : index
    %43 = arith.index_cast %42 : i32 to index
    %44 = vector.load %arg2[%c0_8, %43] : memref<8x2048xf32, #tpu.memory_space<vmem>>, vector<8x128xf32>
    %45 = arith.addf %40, %44 : vector<8x128xf32>
    %46 = arith.maximumf %41, %44 : vector<8x128xf32>
    %c1152_i32 = arith.constant 1152 : i32
    %47 = tpu.assume_multiple %c1152_i32, 128 : i32
    %c0_9 = arith.constant 0 : index
    %48 = arith.index_cast %47 : i32 to index
    %49 = vector.load %arg2[%c0_9, %48] : memref<8x2048xf32, #tpu.memory_space<vmem>>, vector<8x128xf32>
    %50 = arith.addf %45, %49 : vector<8x128xf32>
    %51 = arith.maximumf %46, %49 : vector<8x128xf32>
    %c1280_i32 = arith.constant 1280 : i32
    %52 = tpu.assume_multiple %c1280_i32, 128 : i32
    %c0_10 = arith.constant 0 : index
    %53 = arith.index_cast %52 : i32 to index
    %54 = vector.load %arg2[%c0_10, %53] : memref<8x2048xf32, #tpu.memory_space<vmem>>, vector<8x128xf32>
    %55 = arith.addf %50, %54 : vector<8x128xf32>
    %56 = arith.maximumf %51, %54 : vector<8x128xf32>
    %c1408_i32 = arith.constant 1408 : i32
    %57 = tpu.assume_multiple %c1408_i32, 128 : i32
    %c0_11 = arith.constant 0 : index
    %58 = arith.index_cast %57 : i32 to index
    %59 = vector.load %arg2[%c0_11, %58] : memref<8x2048xf32, #tpu.memory_space<vmem>>, vector<8x128xf32>
    %60 = arith.addf %55, %59 : vector<8x128xf32>
    %61 = arith.maximumf %56, %59 : vector<8x128xf32>
    %c1536_i32 = arith.constant 1536 : i32
    %62 = tpu.assume_multiple %c1536_i32, 128 : i32
    %c0_12 = arith.constant 0 : index
    %63 = arith.index_cast %62 : i32 to index
    %64 = vector.load %arg2[%c0_12, %63] : memref<8x2048xf32, #tpu.memory_space<vmem>>, vector<8x128xf32>
    %65 = arith.addf %60, %64 : vector<8x128xf32>
    %66 = arith.maximumf %61, %64 : vector<8x128xf32>
    %c1664_i32 = arith.constant 1664 : i32
    %67 = tpu.assume_multiple %c1664_i32, 128 : i32
    %c0_13 = arith.constant 0 : index
    %68 = arith.index_cast %67 : i32 to index
    %69 = vector.load %arg2[%c0_13, %68] : memref<8x2048xf32, #tpu.memory_space<vmem>>, vector<8x128xf32>
    %70 = arith.addf %65, %69 : vector<8x128xf32>
    %71 = arith.maximumf %66, %69 : vector<8x128xf32>
    %c1792_i32 = arith.constant 1792 : i32
    %72 = tpu.assume_multiple %c1792_i32, 128 : i32
    %c0_14 = arith.constant 0 : index
    %73 = arith.index_cast %72 : i32 to index
    %74 = vector.load %arg2[%c0_14, %73] : memref<8x2048xf32, #tpu.memory_space<vmem>>, vector<8x128xf32>
    %75 = arith.addf %70, %74 : vector<8x128xf32>
    %76 = arith.maximumf %71, %74 : vector<8x128xf32>
    %c1920_i32 = arith.constant 1920 : i32
    %77 = tpu.assume_multiple %c1920_i32, 128 : i32
    %c0_15 = arith.constant 0 : index
    %78 = arith.index_cast %77 : i32 to index
    %79 = vector.load %arg2[%c0_15, %78] : memref<8x2048xf32, #tpu.memory_space<vmem>>, vector<8x128xf32>
    %80 = arith.addf %75, %79 : vector<8x128xf32>
    %81 = arith.maximumf %76, %79 : vector<8x128xf32>
    %cst_16 = arith.constant dense<0.000000e+00> : vector<8xf32>
    %82 = vector.multi_reduction <add>, %80, %cst_16 [1] : vector<8x128xf32> to vector<8xf32>
    %cst_17 = arith.constant dense<0xFF800000> : vector<8xf32>
    %83 = vector.multi_reduction <maximumf>, %81, %cst_17 [1] : vector<8x128xf32> to vector<8xf32>
    %cst_18 = arith.constant 4.8828125E-4 : f32
    %84 = vector.broadcast %cst_18 : f32 to vector<8xf32>
    %85 = arith.mulf %82, %84 : vector<8xf32>
    %86 = vector.shape_cast %85 : vector<8xf32> to vector<1x8xf32>
    %c0_19 = arith.constant 0 : index
    %c0_20 = arith.constant 0 : index
    %87 = vector.load %arg3[%c0_19, %c0_20] : memref<1x8xf32, #tpu.memory_space<vmem>>, vector<1x8xf32>
    tpu.vector_store %arg3[%c0_19, %c0_20], %86 {strides = array<i32>} : memref<1x8xf32, #tpu.memory_space<vmem>>, vector<1x8xf32>,
    %88 = vector.shape_cast %83 : vector<8xf32> to vector<1x8xf32>
    %c0_21 = arith.constant 0 : index
    %c0_22 = arith.constant 0 : index
    %89 = vector.load %arg4[%c0_21, %c0_22] : memref<1x8xf32, #tpu.memory_space<vmem>>, vector<1x8xf32>
    tpu.vector_store %arg4[%c0_21, %c0_22], %88 {strides = array<i32>} : memref<1x8xf32, #tpu.memory_space<vmem>>, vector<1x8xf32>,
    return
  }
  func.func @transform_0(%arg0: i32, %arg1: i32) -> (i32, i32) {
    %c0_i32 = arith.constant 0 : i32
    return %arg0, %arg1 : i32, i32
  }
  func.func @transform_1(%arg0: i32, %arg1: i32) -> (i32, i32) {
    %c0_i32 = arith.constant 0 : i32
    %c0_i32_0 = arith.constant 0 : i32
    return %arg0, %c0_i32 : i32, i32
  }
  func.func @transform_2(%arg0: i32, %arg1: i32) -> (i32, i32) {
    %c0_i32 = arith.constant 0 : i32
    %c0_i32_0 = arith.constant 0 : i32
    return %arg0, %c0_i32 : i32, i32
  }
}

</mosaic_0001>

<bundles_post_ra>
// kernel: tpu_custom_call.1
= control target key start
LH: loop header
LB: loop body
LE: loop exit
PB: predicated region body
PF: predicated region fallthrough
CT: control target
= control target key end

     0   :  { %8 = vsyncpa [#allocation3], 0  ;;  %s276_s0 = inlined_call_operand.hbm [shape: f32[8,2048], index: 0, kind: input, shape index: {}]   ;;  %s277_s1 = inlined_call_operand.hbm [shape: f32[1,8], index: 1, kind: output, shape index: {0}]   ;;  %s278_s2 = inlined_call_operand.hbm [shape: f32[1,8], index: 2, kind: output, shape index: {1}]  }
   0x1   :  { %9 = vsyncpa [#allocation4], 0 }
   0x2   :  { %10 = vsyncpa [#allocation7], 0  ;;  %s212_s9 = smov [#allocation2]   ;;  %s140_s13 = scalar_lea.hbm %s276_s0, 2048 }
   0x3   :  { %s17_s10 = sshll.u32 %s212_s9, 4  ;;  %p141_p0 = scmp.ne.s32.totalorder %s276_s0, %s140_s13  ;;  %s18_s10 = int_to_ptr.vmem [resolvable:$true] %s17_s10 }
   0x4   :  { %p144_p1 = scmp.lt.u32.totalorder %s140_s13, %s276_s0 }
   0x6   :  { %p146_p2 = pnand %p144_p1, %p141_p0 }
   0x8   :  { %149 = shalt.err (!%p146_p2)
}
   0x9   :  { %s150_s18 = scalar_lea.vmem %s18_s10, 2048  ;;  %p155_p4 = scmp.lt.s32.totalorder %s18_s10, %s18_s10 }
   0xa   :  { %p151_p3 = scmp.ne.s32.totalorder %s18_s10, %s150_s18  ;;  %p156_p5 = scmp.lt.s32.totalorder %s150_s18, %s150_s18 }
   0xc   :  { %p157_p6 = por %p156_p5, %p155_p4 }
   0xe   :  { %p158_p7 = pnand %p157_p6, %p151_p3 }
  0x10   :  { %161 = shalt.err (!%p158_p7)
}
  0x11   :  { %20 = dma.hbm_to_vmem [thread:$0]  %s276_s0, 2048, %s18_s10, [#allocation3]  }
  0x12   :  { %206 = dma.done.wait [#allocation3], 2048  }
  0x13   :  { %207 = vsyncadd [#allocation3], 4294965248  ;;  %v24_v0 = vld [vmem:[#allocation2] sm:$0xff]  ;;  %v27_v1 = vld [vmem:[#allocation2 + $0x8] sm:$0xff]  ;;  %v92_v46 = vlaneseq  ;;  %s213_s0 = smov [#allocation5]   ;;  %vm99_vm0 = vcmask 57344  }
  0x14   :  { %v31_v2 = vld [vmem:[#allocation2 + $0x10] sm:$0xff]  ;;  %v28_v3 = vadd.f32 %v27_v1, %v24_v0  ;;  %v29_v4 = vmax.f32 %v24_v0, %v27_v1  ;;  %v35_v5 = vld [vmem:[#allocation2 + $0x18] sm:$0xff]  ;;  %v39_v8 = vld [vmem:[#allocation2 + $0x20] sm:$0xff]  ;;  %s114_s21 = sshll.u32 %s213_s0, 4  ;;  %s214_s22 = smov [#allocation6]   ;;  %s115_s21 = int_to_ptr.vmem [resolvable:$true] %s114_s21 }
  0x15   :  { %v43_v11 = vld [vmem:[#allocation2 + $0x28] sm:$0xff]  ;;  %v47_v14 = vld [vmem:[#allocation2 + $0x30] sm:$0xff]  ;;  %v51_v17 = vld [vmem:[#allocation2 + $0x38] sm:$0xff]  ;;  %v93_v47 = vand.u32 127, %v92_v46  ;;  %v95_v48 = vshrl.u32 %v92_v46, 7  ;;  %s124_s23 = sshll.u32 %s214_s22, 4  ;;  %p167_p9 = scmp.lt.s32.totalorder %s115_s21, %s115_s21  ;;  %s243_s23 = int_to_ptr.vmem [resolvable:$true] %s124_s23 }
  0x16   :  { %v32_v6 = vadd.f32 %v31_v2, %v28_v3  ;;  %v33_v7 = vmax.f32 %v29_v4, %v31_v2  ;;  %v55_v20 = vld [vmem:[#allocation2 + $0x40] sm:$0xff]  ;;  %v59_v23 = vld [vmem:[#allocation2 + $0x48] sm:$0xff]  ;;  %v63_v26 = vld [vmem:[#allocation2 + $0x50] sm:$0xff]  ;;  %s162_s24 = scalar_lea.vmem %s115_s21, 16  ;;  %s166_s25 = scalar_lea.vmem %s115_s21, 32 }
  0x17   :  { %v67_v29 = vld [vmem:[#allocation2 + $0x58] sm:$0xff]  ;;  %v71_v32 = vld [vmem:[#allocation2 + $0x60] sm:$0xff]  ;;  %v75_v35 = vld [vmem:[#allocation2 + $0x68] sm:$0xff]  ;;  %v96_v49 = vsub.s32 %v93_v47, %v95_v48  ;;  %p163_p8 = scmp.ne.s32.totalorder %s115_s21, %s162_s24  ;;  %p168_p10 = scmp.lt.s32.totalorder %s166_s25, %s162_s24 }
  0x18   :  { %v36_v9 = vadd.f32 %v35_v5, %v32_v6  ;;  %v37_v10 = vmax.f32 %v33_v7, %v35_v5  ;;  %v79_v38 = vld [vmem:[#allocation2 + $0x70] sm:$0xff]  ;;  %v83_v41 = vld [vmem:[#allocation2 + $0x78] sm:$0xff] }
  0x19   :  { %p169_p11 = por %p168_p10, %p167_p9 }
  0x1a   :  { %v40_v12 = vadd.f32 %v39_v8, %v36_v9  ;;  %v41_v13 = vmax.f32 %v37_v10, %v39_v8 }
  0x1b   :  { %p170_p12 = pnand %p169_p11, %p163_p8 }
  0x1c   :  { %v44_v15 = vadd.f32 %v43_v11, %v40_v12  ;;  %v45_v16 = vmax.f32 %v41_v13, %v43_v11 }
  0x1e   :  { %v48_v18 = vadd.f32 %v47_v14, %v44_v15  ;;  %v49_v19 = vmax.f32 %v45_v16, %v47_v14 }
  0x20   :  { %v52_v21 = vadd.f32 %v51_v17, %v48_v18  ;;  %v53_v22 = vmax.f32 %v49_v19, %v51_v17 }
  0x22   :  { %v56_v24 = vadd.f32 %v55_v20, %v52_v21  ;;  %v57_v25 = vmax.f32 %v53_v22, %v55_v20 }
  0x24   :  { %v60_v27 = vadd.f32 %v59_v23, %v56_v24  ;;  %v61_v28 = vmax.f32 %v57_v25, %v59_v23 }
  0x26   :  { %v64_v30 = vadd.f32 %v63_v26, %v60_v27  ;;  %v65_v31 = vmax.f32 %v61_v28, %v63_v26 }
  0x28   :  { %v68_v33 = vadd.f32 %v67_v29, %v64_v30  ;;  %v69_v34 = vmax.f32 %v65_v31, %v67_v29 }
  0x2a   :  { %v72_v36 = vadd.f32 %v71_v32, %v68_v33  ;;  %v73_v37 = vmax.f32 %v69_v34, %v71_v32 }
  0x2c   :  { %v76_v39 = vadd.f32 %v75_v35, %v72_v36  ;;  %v77_v40 = vmax.f32 %v73_v37, %v75_v35 }
  0x2e   :  { %v80_v42 = vadd.f32 %v79_v38, %v76_v39  ;;  %v81_v43 = vmax.f32 %v77_v40, %v79_v38 }
  0x30   :  { %v84_v44 = vadd.f32 %v83_v41, %v80_v42  ;;  %v85_v45 = vmax.f32 %v81_v43, %v83_v41 }
  0x32   :  { %86 = vadd.xlane.f32.xlu0 %v84_v44 }
  0x36   :  { %88 = vmax.xlane.f32.xlu0 %v85_v45 }
  0xbf   :  { %v87_v50 = vpop.xlane.xlu0 %86 }
  0xc0   :  { %v90_v51 = vmul.f32 0.00048828125, %v87_v50 }
  0xc2   :  { %v97_v52 = vrot.slane %v90_v51, %v96_v49 }
  0xc3   :  { %v89_v53 = vpop.xlane.xlu0 %88 }
  0xc4   :  { %v105_v54 = vrot.slane %v89_v53, %v96_v49  ;;  %100 = vst.msk [vmem:[#allocation5] sm:$0x1] %vm99_vm0, %v97_v52 }
  0xc5   :  { %173 = shalt.err (!%p170_p12)
}
  0xc6   :  { %s174_s28 = scalar_lea.hbm %s277_s1, 16 }
  0xc7   :  { %p175_p13 = scmp.ne.s32.totalorder %s277_s1, %s174_s28  ;;  %p178_p0 = scmp.lt.u32.totalorder %s174_s28, %s277_s1 }
  0xc9   :  { %p180_p1 = pnand %p178_p0, %p175_p13 }
  0xcb   :  { %183 = shalt.err (!%p180_p1)
}
  0xcc   :  { %117 = dma.vmem_to_hbm [thread:$0]  %s115_s21, 16, %s277_s1, [#allocation4]   ;;  %107 = vst.msk [vmem:[#allocation6] sm:$0x1] %vm99_vm0, %v105_v54 }
  0xcd   :  { %s184_s7 = scalar_lea.vmem %s243_s23, 16  ;;  %s188_s8 = scalar_lea.vmem %s243_s23, 32 }
  0xce   :  { %p185_p2 = scmp.ne.s32.totalorder %s243_s23, %s184_s7  ;;  %p189_p3 = scmp.lt.s32.totalorder %s243_s23, %s243_s23 }
  0xcf   :  { %p190_p4 = scmp.lt.s32.totalorder %s188_s8, %s184_s7 }
  0xd1   :  { %p191_p5 = por %p190_p4, %p189_p3 }
  0xd3   :  { %p192_p6 = pnand %p191_p5, %p185_p2 }
  0xd5   :  { %195 = shalt.err (!%p192_p6)
}
  0xd6   :  { %s196_s11 = scalar_lea.hbm %s278_s2, 16 }
  0xd7   :  { %p197_p7 = scmp.ne.s32.totalorder %s278_s2, %s196_s11  ;;  %p200_p8 = scmp.lt.u32.totalorder %s196_s11, %s278_s2 }
  0xd9   :  { %p202_p9 = pnand %p200_p8, %p197_p7 }
  0xdb   :  { %205 = shalt.err (!%p202_p9)
}
  0xdc   :  { %127 = dma.vmem_to_hbm [thread:$0]  %s243_s23, 16, %s278_s2, [#allocation7]  }
  0xdd   :  { %208 = dma.done.wait [#allocation4], 16  }
  0xde   :  { %209 = vsyncadd [#allocation4], 4294967280 }
  0xdf   :  { %210 = dma.done.wait [#allocation7], 16  }
  0xe0   :  { %211 = vsyncadd [#allocation7], 4294967280 }
  0xe1   :  { %134 = vsyncpa [#allocation3], 1 }
  0xe2   :  { %135 = vsyncpa [#allocation4], 1 }
  0xe3   :  { %136 = vsyncpa [#allocation7], 1 }

</bundles_post_ra>
